<compile_context>
chip_gen: v7x
topology: tpu7x:2x2x1
jax: 0.10.0
libtpu: 0.0.40
codegen_flags: <defaults>
</compile_context>

<pallas_src>
import jax
import jax.numpy as jnp
from jax import lax
from jax.experimental import pallas as pl
from jax.experimental.pallas import tpu as pltpu

MiB = 1024 * 1024


def _vmem_capacity_bytes():
    """Physical VMEM per TensorCore, or None if the query is unavailable."""
    try:
        return int(pltpu.get_tpu_info().vmem_capacity_bytes)
    except Exception:
        return None


# ----------------------------------------------------------------------------
# Kernel 1: tiled matmul with f32 VMEM accumulator (GCN aggregation, bf16 ops)
# ----------------------------------------------------------------------------
def _matmul_kernel(a_ref, b_ref, o_ref, acc_ref):
    @pl.when(pl.program_id(2) == 0)
    def _():
        acc_ref[...] = jnp.zeros_like(acc_ref)

    acc_ref[...] += jnp.dot(a_ref[...], b_ref[...],
                            preferred_element_type=jnp.float32)

    @pl.when(pl.program_id(2) == pl.num_programs(2) - 1)
    def _():
        o_ref[...] = acc_ref[...]


def _tile_and_pad(dim, preferred, align):
    """Pick a legal tile for `dim`.

    Returns (tile, padded_dim) with tile | padded_dim and padded_dim >= dim.
    Never falls back to one huge full-dim block (the old _pick_tile bug): use a
    large aligned divisor of dim, or zero-pad dim up to a multiple of the
    preferred tile.
    """
    if dim <= preferred:
        return dim, dim                      # single full-dim block: always legal
    t = (preferred // align) * align
    while t >= align:
        if dim % t == 0 and 4 * t > preferred:
            return t, dim
        t -= align
    tile = (preferred // align) * align
    return tile, ((dim + tile - 1) // tile) * tile


def matmul_f32acc(a, b):
    """C = A @ B (operand dtype preserved, e.g. bf16), f32 accumulate/output."""
    M, K = a.shape
    K2, N = b.shape
    assert K == K2

    cap = _vmem_capacity_bytes()
    if cap is not None and cap >= 100 * MiB:      # v5e / v6e: 128 MiB VMEM
        pm, pn, pk = 1024, 1024, 1024
        vmem_limit = 96 * MiB
    elif cap is not None:                         # v7x: 64 MiB VMEM per TC
        pm, pn, pk = 512, 1024, 512
        vmem_limit = min(48 * MiB, (3 * cap) // 4)
    else:                                         # unknown: conservative
        pm, pn, pk = 512, 1024, 512
        vmem_limit = 32 * MiB

    tm, Mp = _tile_and_pad(M, pm, 8)
    tn, Np = _tile_and_pad(N, pn, 128)
    tk, Kp = _tile_and_pad(K, pk, 128)

    if (Mp, Kp) != (M, K):
        a = jnp.zeros((Mp, Kp), a.dtype).at[:M, :K].set(a)
    if (Kp, Np) != (K, N):
        b = jnp.zeros((Kp, Np), b.dtype).at[:K, :N].set(b)

    out = pl.pallas_call(
        _matmul_kernel,
        out_shape=jax.ShapeDtypeStruct((Mp, Np), jnp.float32),
        grid=(Mp // tm, Np // tn, Kp // tk),
        in_specs=[
            pl.BlockSpec((tm, tk), lambda i, j, k: (i, k)),
            pl.BlockSpec((tk, tn), lambda i, j, k: (k, j)),
        ],
        out_specs=pl.BlockSpec((tm, tn), lambda i, j, k: (i, j)),
        scratch_shapes=[pltpu.VMEM((tm, tn), jnp.float32)],
        compiler_params=pltpu.CompilerParams(
            dimension_semantics=("parallel", "parallel", "arbitrary"),
            vmem_limit_bytes=vmem_limit,
        ),
    )(a, b)
    if (Mp, Np) != (M, N):
        out = out[:M, :N]
    return out


# ----------------------------------------------------------------------------
# Kernel 2: fused 3-layer LSTM, chunked over time, node-parallel outer axis.
# ----------------------------------------------------------------------------
def _fused_lstm_kernel(x_ref, w_ref, b_ref, out_ref, h_scr, c_scr):
    """Runs T_CHUNK timesteps of the full L-layer LSTM stack per grid step.

    x_ref  : (tn, T_CHUNK*HP)  lane-padded aggregated features, this node tile
    w_ref  : (L, 2*HP, 4*HP)   fused [W_ih^T ; W_hh^T], lane/gate padded
    b_ref  : (L, 1, 4*HP)      fused (b_ih + b_hh), gate padded
    out_ref: (tn, T_CHUNK*HP)  top-layer h for each timestep of this chunk
    h_scr  : (L, tn, HP)       hidden state, carried across the time-chunk axis
    c_scr  : (L, tn, HP)       cell state, carried across the time-chunk axis
    """
    # New node tile -> reset the recurrent state.
    @pl.when(pl.program_id(1) == 0)
    def _():
        h_scr[...] = jnp.zeros_like(h_scr)
        c_scr[...] = jnp.zeros_like(c_scr)

    n_layers, _, HP = h_scr.shape
    t_chunk = x_ref.shape[-1] // HP

    # Statically unrolled chunk loop (T_CHUNK is small): every slice below is a
    # static, 128-aligned, lane-dense slice.
    for tt in range(t_chunk):
        inp = x_ref[:, tt * HP:(tt + 1) * HP]                    # (tn, HP)
        for l in range(n_layers):
            # Single K = 2*HP dot per layer: [x | h_prev] @ [W_ih^T ; W_hh^T].
            xh = jnp.concatenate([inp, h_scr[l]], axis=-1)       # (tn, 2*HP)
            gates = jnp.dot(xh, w_ref[l],
                            preferred_element_type=jnp.float32) + b_ref[l]
            # PyTorch gate order i, f, g, o -- 128-aligned static lane slices.
            i = jax.nn.sigmoid(gates[:, 0 * HP:1 * HP])
            f = jax.nn.sigmoid(gates[:, 1 * HP:2 * HP])
            g = jnp.tanh(gates[:, 2 * HP:3 * HP])
            o = jax.nn.sigmoid(gates[:, 3 * HP:4 * HP])
            c_new = f * c_scr[l] + i * g
            h_new = o * jnp.tanh(c_new)
            c_scr[l] = c_new
            h_scr[l] = h_new
            inp = h_new
        out_ref[:, tt * HP:(tt + 1) * HP] = inp                  # full-lane store


def fused_lstm(x_pad, w_fused, b_pad, n_nodes, seq_len, hp, t_chunk, tn_nodes):
    """x_pad: (N, T*HP) lane-padded features.  Returns (N, T*HP)."""
    n_layers = w_fused.shape[0]
    grid = (n_nodes // tn_nodes, seq_len // t_chunk)
    return pl.pallas_call(
        _fused_lstm_kernel,
        out_shape=jax.ShapeDtypeStruct((n_nodes, seq_len * hp), jnp.float32),
        grid=grid,
        in_specs=[
            pl.BlockSpec((tn_nodes, t_chunk * hp), lambda ni, ti: (ni, ti)),
            pl.BlockSpec(w_fused.shape, lambda ni, ti: (0, 0, 0)),   # resident
            pl.BlockSpec(b_pad.shape, lambda ni, ti: (0, 0, 0)),     # resident
        ],
        out_specs=pl.BlockSpec((tn_nodes, t_chunk * hp), lambda ni, ti: (ni, ti)),
        scratch_shapes=[
            pltpu.VMEM((n_layers, tn_nodes, hp), jnp.float32),   # h, all layers
            pltpu.VMEM((n_layers, tn_nodes, hp), jnp.float32),   # c, all layers
        ],
        compiler_params=pltpu.CompilerParams(
            # node tiles independent (megacore on v7x); time is a true recurrence
            dimension_semantics=("parallel", "arbitrary"),
        ),
    )(x_pad, w_fused, b_pad)


# ----------------------------------------------------------------------------
# Parameters: nn.LSTM(n_feats, 10, num_layers=3) weights, stored raw (for the
# reference) and fused/transposed/lane-padded (H=10 -> 128) for the kernel.
# ----------------------------------------------------------------------------
def _fused_layer_weight(w_ih, w_hh, H, HP):
    """(4H, in_dim) + (4H, H) PyTorch weights -> (2*HP, 4*HP) fused operand.

    Rows [0, in_dim)  : W_ih^T  (input half of the concatenated [x | h] operand)
    Rows [HP, HP + H) : W_hh^T  (recurrent half)
    All other rows/cols are zero, which keeps padded h/c lanes exactly zero.
    """
    in_dim = w_ih.shape[1]
    W = jnp.zeros((2 * HP, 4 * HP), jnp.float32)
    for g in range(4):
        W = W.at[:in_dim, g * HP:g * HP + H].set(w_ih[g * H:(g + 1) * H, :].T)
        W = W.at[HP:HP + H, g * HP:g * HP + H].set(w_hh[g * H:(g + 1) * H, :].T)
    return W


def _pad_bias(b, H, HP):
    out = jnp.zeros((4 * HP,), jnp.float32)
    for g in range(4):
        out = out.at[g * HP:g * HP + H].set(b[g * H:(g + 1) * H])
    return out.reshape(1, 4 * HP)


class GCNLSTMParams:
    def __init__(self, n_feats, n_hidden=10, n_layers=3, seed=42, hidden_pad=128):
        # TODO(synk): n_feats > hidden_pad would need a separate layer-0 input
        # block/weight; not needed at these sizes.
        assert n_feats <= hidden_pad
        self.n_feats = n_feats
        self.n_hidden = n_hidden
        self.n_layers = n_layers
        self.hp = hidden_pad
        H, HP = n_hidden, hidden_pad
        k = 1.0 / (n_hidden ** 0.5)
        key = jax.random.PRNGKey(seed)

        self.layers_raw = []
        w_list, b_list = [], []
        for layer in range(n_layers):
            in_size = n_feats if layer == 0 else n_hidden
            key, k1, k2, k3, k4 = jax.random.split(key, 5)
            w_ih = jax.random.uniform(k1, (4 * H, in_size), jnp.float32, -k, k)
            w_hh = jax.random.uniform(k2, (4 * H, H), jnp.float32, -k, k)
            b_ih = jax.random.uniform(k3, (4 * H,), jnp.float32, -k, k)
            b_hh = jax.random.uniform(k4, (4 * H,), jnp.float32, -k, k)
            b = b_ih + b_hh
            self.layers_raw.append((w_ih, w_hh, b))
            w_list.append(_fused_layer_weight(w_ih, w_hh, H, HP))
            b_list.append(_pad_bias(b, H, HP))

        self.w_fused = jnp.stack(w_list, axis=0)   # (L, 2*HP, 4*HP)
        self.b_pad = jnp.stack(b_list, axis=0)     # (L, 1, 4*HP)

        # Correctness guard (per review): anything feeding the padded gate lanes
        # must be exactly zero, otherwise padded h/c lanes would drift away from
        # zero and corrupt real lanes through the next layer's matmul.
        for g in range(4):
            lo, hi = g * HP + H, (g + 1) * HP
            assert float(jnp.abs(self.w_fused[:, :, lo:hi]).max()) == 0.0
            assert float(jnp.abs(self.b_pad[:, :, lo:hi]).max()) == 0.0


# ----------------------------------------------------------------------------
# GCNLSTM forward
# ----------------------------------------------------------------------------
def _largest_divisor_leq(n, cap):
    for d in range(min(n, cap), 0, -1):
        if n % d == 0:
            return d
    return 1


def _pick_node_tile(n):
    # TODO(synk): large N not divisible by 256 would want padding/masking of the
    # node axis; at these sizes one full-N tile is fine.
    if n > 256 and n % 256 == 0:
        return 256
    return n


def gcn_lstm_forward(params, adj, feature, t_chunk=8):
    """
    adj:     (N, N) dense adjacency, adj[dst, src] = 1 for edge src -> dst.
    feature: (N, T, n_feats) node feature sequences (batch_first).
    returns: (N, T, n_hidden) top-layer LSTM hidden sequence.
    """
    N, T, F = feature.shape
    H, HP = params.n_hidden, params.hp

    # 1) GCN aggregation as one tiled MXU matmul.  bf16 operands (adjacency is
    #    0/1, exact in bf16; features lose <0.5%), f32 accumulation.
    agg = matmul_f32acc(adj.astype(jnp.bfloat16),
                        feature.reshape(N, T * F).astype(jnp.bfloat16))  # (N,T*F)

    # 2) Zero-pad the per-timestep feature lanes F -> HP so each timestep is a
    #    128-aligned lane slice and [x_t | h_prev] forms a single K=2*HP dot.
    x_pad = jnp.zeros((N, T, HP), jnp.float32)
    x_pad = x_pad.at[:, :, :F].set(agg.reshape(N, T, F)).reshape(N, T * HP)

    # 3) Fused 3-layer recurrence: grid = (node tiles, time chunks).
    tc = _largest_divisor_leq(T, t_chunk)
    tn = _pick_node_tile(N)
    out = fused_lstm(x_pad, params.w_fused, params.b_pad, N, T, HP, tc, tn)

    return out.reshape(N, T, HP)[:, :, :H]


# ----------------------------------------------------------------------------
# Pure-JAX reference for verification (unpadded weights, f32 LSTM)
# ----------------------------------------------------------------------------
def _reference(params, adj, feature, agg_dtype=jnp.float32):
    """agg_dtype=bfloat16 evaluates the aggregation on the same bf16-rounded
    operands the kernel's MXU sees (adjacency 0/1 is exact in bf16), keeping
    the comparison tight.  All LSTM math is f32 at HIGHEST matmul precision."""
    prec = lax.Precision.HIGHEST
    a = adj.astype(agg_dtype).astype(jnp.float32)
    xf = feature.astype(agg_dtype).astype(jnp.float32)
    h = jnp.einsum("vu,utf->vtf", a, xf, precision=prec)
    x = jnp.transpose(h, (1, 0, 2))                              # (T, N, F)
    H = params.n_hidden
    for (w_ih, w_hh, b) in params.layers_raw:
        T, N, _ = x.shape
        h_t = jnp.zeros((N, H), jnp.float32)
        c_t = jnp.zeros((N, H), jnp.float32)
        outs = []
        for t in range(T):
            gates = (jnp.dot(x[t], w_ih.T, precision=prec)
                     + jnp.dot(h_t, w_hh.T, precision=prec) + b)
            i = jax.nn.sigmoid(gates[:, 0 * H:1 * H])
            f = jax.nn.sigmoid(gates[:, 1 * H:2 * H])
            g = jnp.tanh(gates[:, 2 * H:3 * H])
            o = jax.nn.sigmoid(gates[:, 3 * H:4 * H])
            c_t = f * c_t + i * g
            h_t = o * jnp.tanh(c_t)
            outs.append(h_t)
        x = jnp.stack(outs, axis=0)
    return jnp.transpose(x, (1, 0, 2))


if __name__ == "__main__":
    N_NODES, SEQ_LEN, N_FEATS = 8, 8, 4

    key = jax.random.PRNGKey(0)
    k_feat, k_adj = jax.random.split(key)

    feature = jax.random.normal(k_feat, (N_NODES, SEQ_LEN, N_FEATS), jnp.float32)
    # random directed graph, adj[dst, src] = 1 if edge src -> dst
    adj = (jax.random.uniform(k_adj, (N_NODES, N_NODES)) < 0.4).astype(jnp.float32)

    params = GCNLSTMParams(N_FEATS, n_hidden=10, n_layers=3, seed=42)

    # t_chunk=4 -> time grid of 2 chunks: exercises the in-kernel chunk loop AND
    # the h/c carry across grid steps.
    out = gcn_lstm_forward(params, adj, feature, t_chunk=4)
    out = jax.block_until_ready(out)

    # Reference evaluated with the aggregation on the same bf16-rounded operands
    # the kernel uses (exact for the 0/1 adjacency; accepted small deviation for
    # the features, per the perf review); LSTM reference stays in f32.
    ref = _reference(params, adj, feature, agg_dtype=jnp.bfloat16)

    assert out.shape == (N_NODES, SEQ_LEN, params.n_hidden)
    assert jnp.allclose(out, ref, atol=1e-4, rtol=1e-4), "mismatch vs reference"

    print("KERNEL_OK")
</pallas_src>

<mosaic_0001>
module attributes {stable_mosaic.version = 11 : i64} {
  func.func @_matmul_kernel(%arg0: i32, %arg1: i32, %arg2: i32, %arg3: memref<8x8xbf16, #tpu.memory_space<vmem>>, %arg4: memref<8x32xbf16, #tpu.memory_space<vmem>>, %arg5: memref<8x32xf32, #tpu.memory_space<vmem>>, %arg6: memref<8x32xf32, #tpu.memory_space<vmem>>) attributes {dimension_semantics = [#tpu.dimension_semantics<parallel>, #tpu.dimension_semantics<parallel>, #tpu.dimension_semantics<arbitrary>], iteration_bounds = array<i64: 1, 1, 1>, scalar_prefetch = 0 : i64, scratch_operands = 1 : i64, tpu.core_type = #tpu.core_type<tc>, window_params = [{transform_indices = @transform_0, window_bounds = array<i64: 8, 8>}, {transform_indices = @transform_1, window_bounds = array<i64: 8, 32>}, {transform_indices = @transform_2, window_bounds = array<i64: 8, 32>}]} {
    %c0_i32 = arith.constant 0 : i32
    %0 = arith.cmpi eq, %arg2, %c0_i32 : i32
    %1 = arith.extui %0 : i1 to i32
    %c0_i32_0 = arith.constant 0 : i32
    %2 = arith.cmpi ne, %1, %c0_i32_0 : i32
    scf.if %2 {
      %cst_10 = arith.constant 0.000000e+00 : f32
      %12 = vector.broadcast %cst_10 : f32 to vector<8x32xf32>
      %c0_11 = arith.constant 0 : index
      %c0_12 = arith.constant 0 : index
      %13 = vector.load %arg6[%c0_11, %c0_12] : memref<8x32xf32, #tpu.memory_space<vmem>>, vector<8x32xf32>
      tpu.vector_store %arg6[%c0_11, %c0_12], %12 {strides = array<i32>} : memref<8x32xf32, #tpu.memory_space<vmem>>, vector<8x32xf32>,
    } else {
    }
    %c0 = arith.constant 0 : index
    %c0_1 = arith.constant 0 : index
    %3 = vector.load %arg6[%c0, %c0_1] : memref<8x32xf32, #tpu.memory_space<vmem>>, vector<8x32xf32>
    %c0_2 = arith.constant 0 : index
    %c0_3 = arith.constant 0 : index
    %4 = vector.load %arg3[%c0_2, %c0_3] : memref<8x8xbf16, #tpu.memory_space<vmem>>, vector<8x8xbf16>
    %c0_4 = arith.constant 0 : index
    %c0_5 = arith.constant 0 : index
    %5 = vector.load %arg4[%c0_4, %c0_5] : memref<8x32xbf16, #tpu.memory_space<vmem>>, vector<8x32xbf16>
    %cst = arith.constant dense<0.000000e+00> : vector<8x32xf32>
    %6 = tpu.matmul %4, %5, %cst {dimension_numbers = #tpu.dot_dimension_numbers<[1], [0], [0], [1], [0, 0, 1, 1], [], []>} : vector<8x8xbf16>, vector<8x32xbf16>, vector<8x32xf32> -> vector<8x32xf32>
    %7 = arith.addf %3, %6 : vector<8x32xf32>
    %c0_6 = arith.constant 0 : index
    %c0_7 = arith.constant 0 : index
    %8 = vector.load %arg6[%c0_6, %c0_7] : memref<8x32xf32, #tpu.memory_space<vmem>>, vector<8x32xf32>
    tpu.vector_store %arg6[%c0_6, %c0_7], %7 {strides = array<i32>} : memref<8x32xf32, #tpu.memory_space<vmem>>, vector<8x32xf32>,
    %c0_i32_8 = arith.constant 0 : i32
    %9 = arith.cmpi eq, %arg2, %c0_i32_8 : i32
    %10 = arith.extui %9 : i1 to i32
    %c0_i32_9 = arith.constant 0 : i32
    %11 = arith.cmpi ne, %10, %c0_i32_9 : i32
    scf.if %11 {
      %c0_10 = arith.constant 0 : index
      %c0_11 = arith.constant 0 : index
      %12 = vector.load %arg6[%c0_10, %c0_11] : memref<8x32xf32, #tpu.memory_space<vmem>>, vector<8x32xf32>
      %c0_12 = arith.constant 0 : index
      %c0_13 = arith.constant 0 : index
      %13 = vector.load %arg5[%c0_12, %c0_13] : memref<8x32xf32, #tpu.memory_space<vmem>>, vector<8x32xf32>
      tpu.vector_store %arg5[%c0_12, %c0_13], %12 {strides = array<i32>} : memref<8x32xf32, #tpu.memory_space<vmem>>, vector<8x32xf32>,
    } else {
    }
    return
  }
  func.func @transform_0(%arg0: i32, %arg1: i32, %arg2: i32) -> (i32, i32) {
    %c0_i32 = arith.constant 0 : i32
    return %arg0, %arg2 : i32, i32
  }
  func.func @transform_1(%arg0: i32, %arg1: i32, %arg2: i32) -> (i32, i32) {
    %c0_i32 = arith.constant 0 : i32
    return %arg2, %arg1 : i32, i32
  }
  func.func @transform_2(%arg0: i32, %arg1: i32, %arg2: i32) -> (i32, i32) {
    %c0_i32 = arith.constant 0 : i32
    return %arg0, %arg1 : i32, i32
  }
}

</mosaic_0001>

<bundles_post_ra>
// kernel: tpu_custom_call.1
= control target key start
LH: loop header
LB: loop body
LE: loop exit
PB: predicated region body
PF: predicated region fallthrough
CT: control target
= control target key end

     0   :  { %7 = vsyncpa [#allocation4], 0  ;;  %s263_s0 = inlined_call_operand.hbm [shape: bf16[8,8], index: 0, kind: input, shape index: {}]   ;;  %s264_s1 = inlined_call_operand.hbm [shape: bf16[8,32], index: 1, kind: input, shape index: {}]   ;;  %s265_s2 = inlined_call_operand.hbm [shape: f32[8,32], index: 2, kind: output, shape index: {}]  }
   0x1   :  { %8 = vsyncpa [#allocation7], 0 }
   0x2   :  { %9 = vsyncpa [#allocation5], 0  ;;  %s204_s9 = smov [#allocation3]   ;;  %s205_s11 = smov [#allocation6]  }
   0x3   :  { %s16_s10 = sshll.u32 %s204_s9, 4  ;;  %s26_s12 = sshll.u32 %s205_s11, 4  ;;  %s17_s10 = int_to_ptr.vmem [resolvable:$true] %s16_s10  ;;  %s27_s12 = int_to_ptr.vmem [resolvable:$true] %s26_s12 }
   0x4   :  { %s132_s15 = scalar_lea.hbm %s263_s0, 64 }
   0x5   :  { %p133_p0 = scmp.ne.s32.totalorder %s263_s0, %s132_s15  ;;  %p136_p1 = scmp.lt.u32.totalorder %s132_s15, %s263_s0 }
   0x7   :  { %p138_p2 = pnand %p136_p1, %p133_p0 }
   0x9   :  { %141 = shalt.err (!%p138_p2)
}
   0xa   :  { %s142_s20 = scalar_lea.vmem %s17_s10, 64  ;;  %p147_p4 = scmp.lt.s32.totalorder %s17_s10, %s17_s10 }
   0xb   :  { %p143_p3 = scmp.ne.s32.totalorder %s17_s10, %s142_s20  ;;  %p148_p5 = scmp.lt.s32.totalorder %s142_s20, %s142_s20 }
   0xd   :  { %p149_p6 = por %p148_p5, %p147_p4 }
   0xf   :  { %p150_p7 = pnand %p149_p6, %p143_p3 }
  0x11   :  { %153 = shalt.err (!%p150_p7)
}
  0x12   :  { %19 = dma.hbm_to_vmem [thread:$0]  %s263_s0, 64, %s17_s10, [#allocation4]  }
  0x13   :  { %s154_s25 = scalar_lea.hbm %s264_s1, 64 }
  0x14   :  { %p155_p8 = scmp.ne.s32.totalorder %s264_s1, %s154_s25  ;;  %p158_p9 = scmp.lt.u32.totalorder %s154_s25, %s264_s1 }
  0x16   :  { %p160_p10 = pnand %p158_p9, %p155_p8 }
  0x18   :  { %163 = shalt.err (!%p160_p10)
}
  0x19   :  { %s164_s30 = scalar_lea.vmem %s27_s12, 64  ;;  %p169_p12 = scmp.lt.s32.totalorder %s27_s12, %s27_s12 }
  0x1a   :  { %p165_p11 = scmp.ne.s32.totalorder %s27_s12, %s164_s30  ;;  %p170_p13 = scmp.lt.s32.totalorder %s164_s30, %s164_s30 }
  0x1c   :  { %p171_p0 = por %p170_p13, %p169_p12 }
  0x1e   :  { %p172_p1 = pnand %p171_p0, %p165_p11 }
  0x20   :  { %175 = shalt.err (!%p172_p1)
}
  0x21   :  { %29 = dma.hbm_to_vmem [thread:$0]  %s264_s1, 64, %s27_s12, [#allocation7]  }
  0x22   :  { %198 = dma.done.wait [#allocation4], 64  }
  0x23   :  { %199 = vsyncadd [#allocation4], 4294967232 }
  0x24   :  { %200 = dma.done.wait [#allocation7], 64  }
  0x25   :  { %201 = vsyncadd [#allocation7], 4294967232  ;;  %vm41_vm0 = vcmask 261120   ;;  %v206_v0 = vmov 0.0   ;;  %vm207_vm1 = vmmov 0   ;;  %vm50_vm2 = vcmask 1043456  }
  0x26   :  { %42 = vst.msk [vmem:[#allocation2] sm:$0xff] %vm41_vm0, %v206_v0  ;;  %121 = vmatprep.subr.bf16.mxu0 %v206_v0  ;;  %123 = vmatprep.mubr.msk.bf16.mxu0 %vm207_vm1, %v206_v0  ;;  %v45_v1 = vld [vmem:[#allocation6] sm:$0xf]  ;;  %v44_v3 = vld [vmem:[#allocation3] sm:$0xf]  ;;  %vm46_vm3 = vcmask 64512  }
  0x27   :  { %v52_v2 = vsel %vm50_vm2, %v45_v1, 0  ;;  %s208_s1 = smov [#allocation8]  }
  0x28   :  { %122 = vmatpush3.bf16.msra.mxu0 %v52_v2  ;;  %s108_s4 = sshll.u32 %s208_s1, 4  ;;  %s109_s4 = int_to_ptr.vmem [resolvable:$true] %s108_s4 }
  0x29   :  { %s176_s5 = scalar_lea.vmem %s109_s4, 128  ;;  %p181_p3 = scmp.lt.s32.totalorder %s109_s4, %s109_s4 }
  0x2a   :  { %p177_p2 = scmp.ne.s32.totalorder %s109_s4, %s176_s5  ;;  %p182_p4 = scmp.lt.s32.totalorder %s176_s5, %s176_s5 }
  0x2b   :  { %124 = vmatmul.mubr.msk.bf16.vlgmr.msra.gmra.mrb[0].mxu0 %vm46_vm3, %v44_v3 }
  0x2c   :  { %p183_p5 = por %p182_p4, %p181_p3 }
  0x2d   :  { %v43_v4 = vld [vmem:[#allocation2] sm:$0xff] }
  0x2e   :  { %p184_p6 = pnand %p183_p5, %p177_p2 }
  0xfe   :  { %v88_v5 = vpop.f32.mrb[0].mxu0 }
  0xff   :  { %v94_v6 = vadd.f32 %v88_v5, %v43_v4  ;;  %v125_v7 = vpop.f32.mrb[1].mxu0 }
 0x100   :  { %v91_v8 = vpop.f32.mrb[2].mxu0 }
 0x101   :  { %96 = vst.msk [vmem:[#allocation2] sm:$0xff] %vm41_vm0, %v94_v6  ;;  %v126_v9 = vpop.f32.mrb[3].mxu0 }
 0x108   :  { %v100_v10 = vld [vmem:[#allocation2] sm:$0xff] }
 0x109   :  { %101 = vst.msk [vmem:[#allocation8] sm:$0xff] %vm41_vm0, %v100_v10 }
 0x10a   :  { %187 = shalt.err (!%p184_p6)
}
 0x10b   :  { %s188_s8 = scalar_lea.hbm %s265_s2, 128 }
 0x10c   :  { %p189_p7 = scmp.ne.s32.totalorder %s265_s2, %s188_s8  ;;  %p192_p8 = scmp.lt.u32.totalorder %s188_s8, %s265_s2 }
 0x10e   :  { %p194_p9 = pnand %p192_p8, %p189_p7 }
 0x110   :  { %197 = shalt.err (!%p194_p9)
}
 0x111   :  { %111 = dma.vmem_to_hbm [thread:$0]  %s109_s4, 128, %s265_s2, [#allocation5]  }
 0x112   :  { %202 = dma.done.wait [#allocation5], 128  }
 0x113   :  { %203 = vsyncadd [#allocation5], 4294967168 }
 0x114   :  { %115 = vsyncpa [#allocation4], 1 }
 0x115   :  { %116 = vsyncpa [#allocation7], 1 }
 0x116   :  { %117 = vsyncpa [#allocation5], 1 }

</bundles_post_ra>
